<compile_context>
chip_gen: v5e
topology: v5e:2x2
jax: 0.10.0
libtpu: 0.0.40
codegen_flags: <defaults>
</compile_context>

<pallas_src>
import functools

import jax
import jax.numpy as jnp
from jax import lax
from jax.experimental import pallas as pl
from jax.experimental.pallas import tpu as pltpu


def _round_up(x, m):
    return ((x + m - 1) // m) * m


def actor_kernel(eps1, eps2,
                 x_ref, w1_ref, p1_ref, w2_ref, p2_ref, wbmu_ref,
                 out_ref):
    """One batch tile of the TD3 actor forward.

    p1/p2 pack (linear bias, LN weight, LN bias) as 3 rows.
    wbmu packs the lane-padded mu weight (rows 0..fc2-1) and mu bias (last row).
    """
    x = x_ref[...]                                     # (TB, input_dim) f32

    def linear_ln_relu(h_in, w_ref, p_ref, eps):
        p = p_ref[...]                                 # (3, D)
        b, g, beta = p[0:1, :], p[1:2, :], p[2:3, :]
        h = jnp.dot(h_in, w_ref[...], preferred_element_type=jnp.float32) + b
        # One-pass LN stats: the two cross-lane reductions are independent, so
        # they can overlap in the XLU (no mean -> centered -> var dependency).
        mean = jnp.mean(h, axis=-1, keepdims=True)
        mean_sq = jnp.mean(h * h, axis=-1, keepdims=True)
        var = jnp.maximum(mean_sq - mean * mean, 0.0)
        # Fold LN affine into the rsqrt factor: single multiply-add pass.
        s = g * lax.rsqrt(var + eps)
        return jnp.maximum(h * s + (beta - mean * s), 0.0)

    h = linear_ln_relu(x, w1_ref, p1_ref, eps1)        # fc1 + LN(eps=fc2_dims) + relu
    h = linear_ln_relu(h, w2_ref, p2_ref, eps2)        # fc2 + LN(eps=1e-5) + relu

    fc2_dims = wbmu_ref.shape[0] - 1
    wmu = wbmu_ref[0:fc2_dims, :]                      # (fc2, Np)
    bmu = wbmu_ref[fc2_dims:fc2_dims + 1, :]           # (1, Np)
    a = jnp.dot(h, wmu, preferred_element_type=jnp.float32) + bmu
    out_ref[...] = jnp.tanh(a)                         # lane-dense (TB, Np) store


def actor_forward(state, params, fc1_dims, fc2_dims, n_actions):
    B, input_dim = state.shape
    eps1 = float(fc2_dims)   # reproduces nn.LayerNorm(fc1_dims, fc2_dims): eps = fc2_dims
    eps2 = 1e-5

    # Batch tile: sublane-aligned, capped so 2x(double buffer) x TB x dims x 4B
    # stays well under scoped-VMEM defaults on every generation.
    TB = min(256, _round_up(B, 8))
    Bp = _round_up(B, TB)
    # Lane-dense output width (unmasked vst); sliced back below.
    Np = _round_up(n_actions, 128)

    # Host-side packing of the tiny vectors -> fewer, larger DMAs.
    p1 = jnp.concatenate([params["b1"], params["g1"], params["beta1"]], axis=0)  # (3, fc1)
    p2 = jnp.concatenate([params["b2"], params["g2"], params["beta2"]], axis=0)  # (3, fc2)
    wmu_p = jnp.zeros((fc2_dims, Np), jnp.float32).at[:, :n_actions].set(params["wmu"])
    bmu_p = jnp.zeros((1, Np), jnp.float32).at[:, :n_actions].set(params["bmu"])
    wbmu = jnp.concatenate([wmu_p, bmu_p], axis=0)                               # (fc2+1, Np)

    x = state if Bp == B else jnp.pad(state, ((0, Bp - B), (0, 0)))

    kernel = functools.partial(actor_kernel, eps1, eps2)

    out = pl.pallas_call(
        kernel,
        out_shape=jax.ShapeDtypeStruct((Bp, Np), jnp.float32),
        grid=(Bp // TB,),
        in_specs=[
            pl.BlockSpec((TB, input_dim), lambda i: (i, 0)),          # state: tiled on batch
            pl.BlockSpec((input_dim, fc1_dims), lambda i: (0, 0)),    # w1: VMEM-resident
            pl.BlockSpec((3, fc1_dims), lambda i: (0, 0)),            # b1/g1/beta1 slab
            pl.BlockSpec((fc1_dims, fc2_dims), lambda i: (0, 0)),     # w2
            pl.BlockSpec((3, fc2_dims), lambda i: (0, 0)),            # b2/g2/beta2 slab
            pl.BlockSpec((fc2_dims + 1, Np), lambda i: (0, 0)),       # wmu+bmu slab
        ],
        out_specs=pl.BlockSpec((TB, Np), lambda i: (i, 0)),
        compiler_params=pltpu.CompilerParams(
            dimension_semantics=("parallel",)),
    )(x, params["w1"], p1, params["w2"], p2, wbmu)

    return out[:B, :n_actions]


def init_params(key, input_dim, fc1_dims, fc2_dims, n_actions):
    """Deterministic init matching the PyTorch module's uniform ranges."""
    k1, k2, k3, k4, k5, k6 = jax.random.split(key, 6)
    f1 = 1.0 / jnp.sqrt(jnp.float32(fc1_dims))   # fc1.weight.size()[0] == fc1_dims
    f2 = 1.0 / jnp.sqrt(jnp.float32(fc2_dims))   # fc2.weight.size()[0] == fc2_dims
    f3 = 0.003
    # Weights stored as (in, out), i.e. the transpose of PyTorch's (out, in).
    return {
        "w1": jax.random.uniform(k1, (input_dim, fc1_dims), jnp.float32, -f1, f1),
        "b1": jax.random.uniform(k2, (1, fc1_dims), jnp.float32, -f1, f1),
        "g1": jnp.ones((1, fc1_dims), jnp.float32),
        "beta1": jnp.zeros((1, fc1_dims), jnp.float32),
        "w2": jax.random.uniform(k3, (fc1_dims, fc2_dims), jnp.float32, -f2, f2),
        "b2": jax.random.uniform(k4, (1, fc2_dims), jnp.float32, -f2, f2),
        "g2": jnp.ones((1, fc2_dims), jnp.float32),
        "beta2": jnp.zeros((1, fc2_dims), jnp.float32),
        "wmu": jax.random.uniform(k5, (fc2_dims, n_actions), jnp.float32, -f3, f3),
        "bmu": jax.random.uniform(k6, (1, n_actions), jnp.float32, -f3, f3),
    }


def reference_forward(state, params, fc2_dims):
    """Pure-JAX reference (two-pass LayerNorm, PyTorch semantics)."""
    def ln(x, g, b, eps):
        m = jnp.mean(x, axis=-1, keepdims=True)
        v = jnp.mean(jnp.square(x - m), axis=-1, keepdims=True)
        return (x - m) / jnp.sqrt(v + eps) * g + b

    h = state @ params["w1"] + params["b1"]
    h = jnp.maximum(ln(h, params["g1"], params["beta1"], float(fc2_dims)), 0.0)
    h = h @ params["w2"] + params["b2"]
    h = jnp.maximum(ln(h, params["g2"], params["beta2"], 1e-5), 0.0)
    return jnp.tanh(h @ params["wmu"] + params["bmu"])


if __name__ == "__main__":
    key = jax.random.PRNGKey(0)
    k_state, k_params = jax.random.split(key)

    # Small shapes consistent with the module: state is a flat observation vector.
    batch, input_dim, fc1_dims, fc2_dims, n_actions = 8, 16, 32, 32, 4

    state = jax.random.normal(k_state, (batch, input_dim), jnp.float32)
    params = init_params(k_params, input_dim, fc1_dims, fc2_dims, n_actions)

    out = actor_forward(state, params, fc1_dims, fc2_dims, n_actions)
    out = jax.block_until_ready(out)

    ref = reference_forward(state, params, fc2_dims)
    assert out.shape == (batch, n_actions)
    assert jnp.allclose(out, ref, atol=1e-4, rtol=1e-4), "mismatch vs JAX reference"

    print("KERNEL_OK")
</pallas_src>

<mosaic_0001>
module attributes {stable_mosaic.version = 11 : i64} {
  func.func @actor_kernel(%arg0: i32, %arg1: memref<8x16xf32, #tpu.memory_space<vmem>>, %arg2: memref<16x32xf32, #tpu.memory_space<vmem>>, %arg3: memref<3x32xf32, #tpu.memory_space<vmem>>, %arg4: memref<32x32xf32, #tpu.memory_space<vmem>>, %arg5: memref<3x32xf32, #tpu.memory_space<vmem>>, %arg6: memref<33x128xf32, #tpu.memory_space<vmem>>, %arg7: memref<8x128xf32, #tpu.memory_space<vmem>>) attributes {dimension_semantics = [#tpu.dimension_semantics<parallel>], iteration_bounds = array<i64: 1>, scalar_prefetch = 0 : i64, scratch_operands = 0 : i64, tpu.core_type = #tpu.core_type<tc>, window_params = [{transform_indices = @transform_0, window_bounds = array<i64: 8, 16>}, {pipeline_mode = #tpu.pipeline_mode<synchronous>, transform_indices = @transform_1, window_bounds = array<i64: 16, 32>}, {pipeline_mode = #tpu.pipeline_mode<synchronous>, transform_indices = @transform_2, window_bounds = array<i64: 3, 32>}, {pipeline_mode = #tpu.pipeline_mode<synchronous>, transform_indices = @transform_3, window_bounds = array<i64: 32, 32>}, {pipeline_mode = #tpu.pipeline_mode<synchronous>, transform_indices = @transform_4, window_bounds = array<i64: 3, 32>}, {pipeline_mode = #tpu.pipeline_mode<synchronous>, transform_indices = @transform_5, window_bounds = array<i64: 33, 128>}, {transform_indices = @transform_6, window_bounds = array<i64: 8, 128>}]} {
    %c0 = arith.constant 0 : index
    %c0_0 = arith.constant 0 : index
    %0 = vector.load %arg1[%c0, %c0_0] : memref<8x16xf32, #tpu.memory_space<vmem>>, vector<8x16xf32>
    %c0_1 = arith.constant 0 : index
    %c0_2 = arith.constant 0 : index
    %1 = vector.load %arg3[%c0_1, %c0_2] : memref<3x32xf32, #tpu.memory_space<vmem>>, vector<3x32xf32>
    %2 = vector.extract_strided_slice %1 {offsets = [0, 0], sizes = [1, 32], strides = [1, 1]} : vector<3x32xf32> to vector<1x32xf32>
    %3 = vector.extract_strided_slice %1 {offsets = [1, 0], sizes = [1, 32], strides = [1, 1]} : vector<3x32xf32> to vector<1x32xf32>
    %4 = vector.extract_strided_slice %1 {offsets = [2, 0], sizes = [1, 32], strides = [1, 1]} : vector<3x32xf32> to vector<1x32xf32>
    %c0_3 = arith.constant 0 : index
    %c0_4 = arith.constant 0 : index
    %5 = vector.load %arg2[%c0_3, %c0_4] : memref<16x32xf32, #tpu.memory_space<vmem>>, vector<16x32xf32>
    %cst = arith.constant dense<0.000000e+00> : vector<8x32xf32>
    %6 = tpu.matmul %0, %5, %cst {dimension_numbers = #tpu.dot_dimension_numbers<[1], [0], [0], [1], [0, 0, 1, 1], [], []>} : vector<8x16xf32>, vector<16x32xf32>, vector<8x32xf32> -> vector<8x32xf32>
    %7 = vector.broadcast %2 : vector<1x32xf32> to vector<8x32xf32>
    %8 = arith.addf %6, %7 : vector<8x32xf32>
    %cst_5 = arith.constant dense<0.000000e+00> : vector<8xf32>
    %9 = vector.multi_reduction <add>, %8, %cst_5 [1] : vector<8x32xf32> to vector<8xf32>
    %10 = vector.shape_cast %9 : vector<8xf32> to vector<8x1xf32>
    %cst_6 = arith.constant 3.200000e+01 : f32
    %11 = vector.broadcast %cst_6 : f32 to vector<8x1xf32>
    %12 = arith.divf %10, %11 : vector<8x1xf32>
    %13 = arith.mulf %8, %8 : vector<8x32xf32>
    %cst_7 = arith.constant dense<0.000000e+00> : vector<8xf32>
    %14 = vector.multi_reduction <add>, %13, %cst_7 [1] : vector<8x32xf32> to vector<8xf32>
    %15 = vector.shape_cast %14 : vector<8xf32> to vector<8x1xf32>
    %cst_8 = arith.constant 3.200000e+01 : f32
    %16 = vector.broadcast %cst_8 : f32 to vector<8x1xf32>
    %17 = arith.divf %15, %16 : vector<8x1xf32>
    %18 = arith.mulf %12, %12 : vector<8x1xf32>
    %19 = arith.subf %17, %18 : vector<8x1xf32>
    %cst_9 = arith.constant 0.000000e+00 : f32
    %20 = vector.broadcast %cst_9 : f32 to vector<8x1xf32>
    %21 = arith.maximumf %19, %20 : vector<8x1xf32>
    %cst_10 = arith.constant 3.200000e+01 : f32
    %22 = vector.broadcast %cst_10 : f32 to vector<8x1xf32>
    %23 = arith.addf %21, %22 : vector<8x1xf32>
    %24 = math.rsqrt %23 : vector<8x1xf32>
    %25 = vector.broadcast %3 : vector<1x32xf32> to vector<8x32xf32>
    %26 = vector.broadcast %24 : vector<8x1xf32> to vector<8x32xf32>
    %27 = arith.mulf %25, %26 : vector<8x32xf32>
    %28 = arith.mulf %8, %27 : vector<8x32xf32>
    %29 = vector.broadcast %12 : vector<8x1xf32> to vector<8x32xf32>
    %30 = arith.mulf %29, %27 : vector<8x32xf32>
    %31 = vector.broadcast %4 : vector<1x32xf32> to vector<8x32xf32>
    %32 = arith.subf %31, %30 : vector<8x32xf32>
    %33 = arith.addf %28, %32 : vector<8x32xf32>
    %cst_11 = arith.constant 0.000000e+00 : f32
    %34 = vector.broadcast %cst_11 : f32 to vector<8x32xf32>
    %35 = arith.maximumf %33, %34 : vector<8x32xf32>
    %c0_12 = arith.constant 0 : index
    %c0_13 = arith.constant 0 : index
    %36 = vector.load %arg5[%c0_12, %c0_13] : memref<3x32xf32, #tpu.memory_space<vmem>>, vector<3x32xf32>
    %37 = vector.extract_strided_slice %36 {offsets = [0, 0], sizes = [1, 32], strides = [1, 1]} : vector<3x32xf32> to vector<1x32xf32>
    %38 = vector.extract_strided_slice %36 {offsets = [1, 0], sizes = [1, 32], strides = [1, 1]} : vector<3x32xf32> to vector<1x32xf32>
    %39 = vector.extract_strided_slice %36 {offsets = [2, 0], sizes = [1, 32], strides = [1, 1]} : vector<3x32xf32> to vector<1x32xf32>
    %c0_14 = arith.constant 0 : index
    %c0_15 = arith.constant 0 : index
    %40 = vector.load %arg4[%c0_14, %c0_15] : memref<32x32xf32, #tpu.memory_space<vmem>>, vector<32x32xf32>
    %cst_16 = arith.constant dense<0.000000e+00> : vector<8x32xf32>
    %41 = tpu.matmul %35, %40, %cst_16 {dimension_numbers = #tpu.dot_dimension_numbers<[1], [0], [0], [1], [0, 0, 1, 1], [], []>} : vector<8x32xf32>, vector<32x32xf32>, vector<8x32xf32> -> vector<8x32xf32>
    %42 = vector.broadcast %37 : vector<1x32xf32> to vector<8x32xf32>
    %43 = arith.addf %41, %42 : vector<8x32xf32>
    %cst_17 = arith.constant dense<0.000000e+00> : vector<8xf32>
    %44 = vector.multi_reduction <add>, %43, %cst_17 [1] : vector<8x32xf32> to vector<8xf32>
    %45 = vector.shape_cast %44 : vector<8xf32> to vector<8x1xf32>
    %cst_18 = arith.constant 3.200000e+01 : f32
    %46 = vector.broadcast %cst_18 : f32 to vector<8x1xf32>
    %47 = arith.divf %45, %46 : vector<8x1xf32>
    %48 = arith.mulf %43, %43 : vector<8x32xf32>
    %cst_19 = arith.constant dense<0.000000e+00> : vector<8xf32>
    %49 = vector.multi_reduction <add>, %48, %cst_19 [1] : vector<8x32xf32> to vector<8xf32>
    %50 = vector.shape_cast %49 : vector<8xf32> to vector<8x1xf32>
    %cst_20 = arith.constant 3.200000e+01 : f32
    %51 = vector.broadcast %cst_20 : f32 to vector<8x1xf32>
    %52 = arith.divf %50, %51 : vector<8x1xf32>
    %53 = arith.mulf %47, %47 : vector<8x1xf32>
    %54 = arith.subf %52, %53 : vector<8x1xf32>
    %cst_21 = arith.constant 0.000000e+00 : f32
    %55 = vector.broadcast %cst_21 : f32 to vector<8x1xf32>
    %56 = arith.maximumf %54, %55 : vector<8x1xf32>
    %cst_22 = arith.constant 9.99999974E-6 : f32
    %57 = vector.broadcast %cst_22 : f32 to vector<8x1xf32>
    %58 = arith.addf %56, %57 : vector<8x1xf32>
    %59 = math.rsqrt %58 : vector<8x1xf32>
    %60 = vector.broadcast %38 : vector<1x32xf32> to vector<8x32xf32>
    %61 = vector.broadcast %59 : vector<8x1xf32> to vector<8x32xf32>
    %62 = arith.mulf %60, %61 : vector<8x32xf32>
    %63 = arith.mulf %43, %62 : vector<8x32xf32>
    %64 = vector.broadcast %47 : vector<8x1xf32> to vector<8x32xf32>
    %65 = arith.mulf %64, %62 : vector<8x32xf32>
    %66 = vector.broadcast %39 : vector<1x32xf32> to vector<8x32xf32>
    %67 = arith.subf %66, %65 : vector<8x32xf32>
    %68 = arith.addf %63, %67 : vector<8x32xf32>
    %cst_23 = arith.constant 0.000000e+00 : f32
    %69 = vector.broadcast %cst_23 : f32 to vector<8x32xf32>
    %70 = arith.maximumf %68, %69 : vector<8x32xf32>
    %c0_24 = arith.constant 0 : index
    %c0_25 = arith.constant 0 : index
    %71 = vector.load %arg6[%c0_24, %c0_25] : memref<33x128xf32, #tpu.memory_space<vmem>>, vector<32x128xf32>
    %c32 = arith.constant 32 : index
    %c0_26 = arith.constant 0 : index
    %72 = vector.load %arg6[%c32, %c0_26] : memref<33x128xf32, #tpu.memory_space<vmem>>, vector<1x128xf32>
    %cst_27 = arith.constant dense<0.000000e+00> : vector<8x128xf32>
    %73 = tpu.matmul %70, %71, %cst_27 {dimension_numbers = #tpu.dot_dimension_numbers<[1], [0], [0], [1], [0, 0, 1, 1], [], []>} : vector<8x32xf32>, vector<32x128xf32>, vector<8x128xf32> -> vector<8x128xf32>
    %74 = vector.broadcast %72 : vector<1x128xf32> to vector<8x128xf32>
    %75 = arith.addf %73, %74 : vector<8x128xf32>
    %76 = math.tanh %75 : vector<8x128xf32>
    %c0_28 = arith.constant 0 : index
    %c0_29 = arith.constant 0 : index
    %77 = vector.load %arg7[%c0_28, %c0_29] : memref<8x128xf32, #tpu.memory_space<vmem>>, vector<8x128xf32>
    tpu.vector_store %arg7[%c0_28, %c0_29], %76 {strides = array<i32>} : memref<8x128xf32, #tpu.memory_space<vmem>>, vector<8x128xf32>,
    return
  }
  func.func @transform_0(%arg0: i32) -> (i32, i32) {
    %c0_i32 = arith.constant 0 : i32
    %c0_i32_0 = arith.constant 0 : i32
    return %arg0, %c0_i32 : i32, i32
  }
  func.func @transform_1(%arg0: i32) -> (i32, i32) {
    %c0_i32 = arith.constant 0 : i32
    %c0_i32_0 = arith.constant 0 : i32
    %c0_i32_1 = arith.constant 0 : i32
    return %c0_i32, %c0_i32_0 : i32, i32
  }
  func.func @transform_2(%arg0: i32) -> (i32, i32) {
    %c0_i32 = arith.constant 0 : i32
    %c0_i32_0 = arith.constant 0 : i32
    %c0_i32_1 = arith.constant 0 : i32
    return %c0_i32, %c0_i32_0 : i32, i32
  }
  func.func @transform_3(%arg0: i32) -> (i32, i32) {
    %c0_i32 = arith.constant 0 : i32
    %c0_i32_0 = arith.constant 0 : i32
    %c0_i32_1 = arith.constant 0 : i32
    return %c0_i32, %c0_i32_0 : i32, i32
  }
  func.func @transform_4(%arg0: i32) -> (i32, i32) {
    %c0_i32 = arith.constant 0 : i32
    %c0_i32_0 = arith.constant 0 : i32
    %c0_i32_1 = arith.constant 0 : i32
    return %c0_i32, %c0_i32_0 : i32, i32
  }
  func.func @transform_5(%arg0: i32) -> (i32, i32) {
    %c0_i32 = arith.constant 0 : i32
    %c0_i32_0 = arith.constant 0 : i32
    %c0_i32_1 = arith.constant 0 : i32
    return %c0_i32, %c0_i32_0 : i32, i32
  }
  func.func @transform_6(%arg0: i32) -> (i32, i32) {
    %c0_i32 = arith.constant 0 : i32
    %c0_i32_0 = arith.constant 0 : i32
    return %arg0, %c0_i32 : i32, i32
  }
}

</mosaic_0001>

<bundles_post_ra>
// kernel: tpu_custom_call.1
= control target key start
LH: loop header
LB: loop body
LE: loop exit
PB: predicated region body
PF: predicated region fallthrough
CT: control target
= control target key end

     0   :  { %11 = vsyncpa [#allocation3], 0  ;;  %s572_s0 = inlined_call_operand.hbm [shape: f32[8,16], index: 0, kind: input, shape index: {}]   ;;  %s573_s1 = inlined_call_operand.hbm [shape: f32[16,32], index: 1, kind: input, shape index: {}]   ;;  %s574_s2 = inlined_call_operand.hbm [shape: f32[3,32], index: 2, kind: input, shape index: {}]   ;;  %s575_s3 = inlined_call_operand.hbm [shape: f32[32,32], index: 3, kind: input, shape index: {}]   ;;  %s576_s4 = inlined_call_operand.hbm [shape: f32[3,32], index: 4, kind: input, shape index: {}]   ;;  %s577_s5 = inlined_call_operand.hbm [shape: f32[33,128], index: 5, kind: input, shape index: {}]   ;;  %s578_s6 = inlined_call_operand.hbm [shape: f32[8,128], index: 6, kind: output, shape index: {}]  }
   0x1   :  { %12 = vsyncpa [#allocation6], 0 }
   0x2   :  { %13 = vsyncpa [#allocation9], 0 }
   0x3   :  { %14 = vsyncpa [#allocation12], 0  ;;  %s31_s23 = sshll.u32 %s573_s1, 4  ;;  %s32_s23 = int_to_ptr.hbm [resolvable:$true] %s31_s23 }
   0x4   :  { %15 = vsyncpa [#allocation4], 0  ;;  %s491_s24 = smov [#allocation5]   ;;  %s55_s28 = sshll.u32 %s575_s3, 4  ;;  %s56_s28 = int_to_ptr.hbm [resolvable:$true] %s55_s28 }
   0x5   :  { %s33_s25 = sshll.u32 %s491_s24, 4  ;;  %s492_s29 = smov 128   ;;  %s34_s25 = int_to_ptr.vmem [resolvable:$true] %s33_s25 }
   0x6   :  { %s493_s30 = smov 8   ;;  %s494_s7 = smov [#allocation8]  }
   0x7   :  { %39 = dma.hbm_to_vmem [thread:$0]  %s32_s23, 256, %s34_s25, [#allocation6], %s492_s29, %s492_s29, %s493_s30  }
   0x8   :  { %s57_s8 = sshll.u32 %s494_s7, 4  ;;  %s21_s10 = sshll.u32 %s572_s0, 4  ;;  %s58_s8 = int_to_ptr.vmem [resolvable:$true] %s57_s8  ;;  %s22_s10 = int_to_ptr.hbm [resolvable:$true] %s21_s10 }
   0x9   :  { %63 = dma.hbm_to_vmem [thread:$0]  %s56_s28, 512, %s58_s8, [#allocation9], %s492_s29, %s492_s29, %s493_s30  }
   0xa   :  { %s45_s12 = sshll.u32 %s574_s2, 4  ;;  %s495_s13 = smov [#allocation2]   ;;  %s46_s12 = int_to_ptr.hbm [resolvable:$true] %s45_s12 }
   0xb   :  { %s23_s14 = sshll.u32 %s495_s13, 4  ;;  %s496_s15 = smov [#allocation7]   ;;  %s24_s14 = int_to_ptr.vmem [resolvable:$true] %s23_s14 }
   0xc   :  { %26 = dma.hbm_to_vmem [thread:$0]  %s22_s10, 128, %s24_s14, [#allocation3]  }
   0xd   :  { %s47_s16 = sshll.u32 %s496_s15, 4  ;;  %s69_s0 = sshll.u32 %s576_s4, 4  ;;  %s48_s16 = int_to_ptr.vmem [resolvable:$true] %s47_s16  ;;  %s70_s0 = int_to_ptr.hbm [resolvable:$true] %s69_s0 }
   0xe   :  { %50 = dma.hbm_to_vmem [thread:$0]  %s46_s12, 64, %s48_s16, [#allocation6]  }
   0xf   :  { %s79_s21 = sshll.u32 %s577_s5, 4  ;;  %s497_s22 = smov [#allocation10]   ;;  %s80_s21 = int_to_ptr.hbm [resolvable:$true] %s79_s21 }
  0x10   :  { %s71_s2 = sshll.u32 %s497_s22, 4  ;;  %s498_s23 = smov [#allocation11]   ;;  %s72_s2 = int_to_ptr.vmem [resolvable:$true] %s71_s2 }
  0x11   :  { %74 = dma.hbm_to_vmem [thread:$0]  %s70_s0, 64, %s72_s2, [#allocation9]  }
  0x12   :  { %s81_s24 = sshll.u32 %s498_s23, 4  ;;  %s82_s24 = int_to_ptr.vmem [resolvable:$true] %s81_s24 }
  0x13   :  { %87 = dma.hbm_to_vmem [thread:$0]  %s80_s21, 640, %s82_s24, [#allocation12], %s492_s29, %s492_s29, %s493_s30  }
  0x14   :  { %481 = dma.done.wait [#allocation3], 128  }
  0x15   :  { %482 = vsyncadd [#allocation3], 4294967168 }
  0x16   :  { %483 = dma.done.wait [#allocation6], 320  }
  0x17   :  { %484 = vsyncadd [#allocation6], 4294966976 }
  0x18   :  { %485 = dma.done.wait [#allocation9], 576  }
  0x19   :  { %486 = vsyncadd [#allocation9], 4294966720 }
  0x1a   :  { %487 = dma.done.wait [#allocation12], 640  }
  0x1b   :  { %488 = vsyncadd [#allocation12], 4294966656  ;;  %v115_v0 = vld [vmem:[#allocation5 + $0x8] sm:$0xff]  ;;  %v114_v1 = vld [vmem:[#allocation5] sm:$0xff]  ;;  %vm117_vm0 = vcmask 130048   ;;  %vm141_vm1 = vcmask 261120  }
  0x1c   :  { %135 = vmatpush.msra.mxu0 %v115_v0  ;;  %v112_v2 = vld [vmem:[#allocation2] sm:$0xff]  ;;  %v113_v3 = vld [vmem:[#allocation7] sm:$0x7]  ;;  %v499_v10 = vmov 32.0   ;;  %v183_v18 = vld [vmem:[#allocation8 + $0x10] sm:$0xff]  ;;  %s500_s4 = smov [#allocation13]  }
  0x1d   :  { %v116_v4 = vperm.slane %v113_v3, 0  ;;  %305 = vrcp.f32 %v499_v10  ;;  %v184_v17 = vld [vmem:[#allocation8 + $0x18] sm:$0xff]  ;;  %v182_v20 = vld [vmem:[#allocation8 + $0x8] sm:$0xff]  ;;  %v181_v21 = vld [vmem:[#allocation8] sm:$0xff]  ;;  %v172_v34 = vperm.slane %v113_v3, 1  ;;  %v176_v37 = vperm.slane %v113_v3, 2 }
  0x1e   :  { %136 = vmatpush.msra.mxu0 %v114_v1  ;;  %201 = vmatpush.msra.mxu1 %v184_v17  ;;  %v180_v44 = vld [vmem:[#allocation10] sm:$0x7]  ;;  %v242_v53 = vld [vmem:[#allocation11 + $0x10] sm:$0xff]  ;;  %v241_v54 = vld [vmem:[#allocation11 + $0x8] sm:$0xff]  ;;  %s276_s5 = sshll.u32 %s500_s4, 4  ;;  %s278_s27 = sshll.u32 %s578_s6, 4  ;;  %s277_s5 = int_to_ptr.vmem [resolvable:$true] %s276_s5  ;;  %s279_s27 = int_to_ptr.hbm [resolvable:$true] %s278_s27 }
  0x1f   :  { %291 = vmatmul.msk.f32.vlgmr.msra.gmra.mxu0 %vm117_vm0, %v112_v2  ;;  %v185_v45 = vperm.slane %v180_v44, 0  ;;  %v243_v52 = vld [vmem:[#allocation11 + $0x18] sm:$0xff]  ;;  %v240_v55 = vld [vmem:[#allocation11] sm:$0xff] }
  0x20   :  { %202 = vmatpush.msra.mxu1 %v183_v18  ;;  %261 = vmatpush.msra.mxu2 %v243_v52 }
  0x22   :  { %203 = vmatpush.msra.mxu1 %v182_v20  ;;  %262 = vmatpush.msra.mxu2 %v242_v53 }
  0x23   :  { %v306_v11 = vpop.eup %305 }
  0x24   :  { %v146_v12 = vmul.f32 32.0, %v306_v11  ;;  %vm150_vm2 = vweird.f32 %v306_v11  ;;  %204 = vmatpush.msra.mxu1 %v181_v21  ;;  %263 = vmatpush.msra.mxu2 %v241_v54 }
  0x26   :  { %v147_v13 = vsub.f32 1.0, %v146_v12  ;;  %264 = vmatpush.msra.mxu2 %v240_v55 }
  0x28   :  { %v148_v14 = vmul.f32 %v306_v11, %v147_v13 }
  0x2a   :  { %v149_v15 = vadd.f32 %v306_v11, %v148_v14  ;;  %v304_v14 = vld [vmem:[#allocation11 + $0x20] ss:$0 sm:$0xff] }
  0x2c   :  { %v151_v19 = vsel %vm150_vm2, %v306_v11, %v149_v15 }
  0x9c   :  { %v138_v5 = vpop.f32.mrf.mxu0 }
  0x9d   :  { %v139_v6 = vadd.f32 %v138_v5, %v116_v4  ;;  %v232_v4 = vperm.slane %v180_v44, 1 }
  0x9f   :  { %v142_v7 = vsel %vm141_vm1, %v139_v6, 0.0  ;;  %v153_v8 = vmul.f32 %v139_v6, %v139_v6 }
  0xa0   :  { %143 = vadd.xlane.f32.xlu0 %v142_v7  ;;  %v236_v7 = vperm.slane %v180_v44, 2 }
  0xa1   :  { %v154_v9 = vsel %vm141_vm1, %v153_v8, 0.0 }
  0xa8   :  { %155 = vadd.xlane.f32.xlu0 %v154_v9 }
 0x113   :  { %v144_v16 = vpop.xlane.xlu0 %143 }
 0x114   :  { %v152_v22 = vmul.f32 %v151_v19, %v144_v16 }
 0x116   :  { %v158_v24 = vmul.f32 %v152_v22, %v152_v22 }
 0x11b   :  { %v156_v23 = vpop.xlane.xlu0 %155 }
 0x11c   :  { %v157_v25 = vmul.f32 %v156_v23, %v151_v19 }
 0x11e   :  { %v159_v26 = vsub.f32 %v157_v25, %v158_v24 }
 0x120   :  { %v160_v27 = vmax.f32 %v159_v26, 0.0 }
 0x122   :  { %v161_v28 = vadd.f32 32.0, %v160_v27 }
 0x124   :  { %307 = vrsqrt.f32 %v161_v28  ;;  %vm168_vm4 = vweird.f32 %v161_v28 }
 0x12a   :  { %v308_v29 = vpop.eup %307 }
 0x12b   :  { %v163_v30 = vmul.f32 %v308_v29, %v161_v28  ;;  %vm169_vm3 = vweird.f32 %v308_v29 }
 0x12c   :  { %vm170_vm5 = vmor %vm168_vm4, %vm169_vm3 }
 0x12d   :  { %v164_v31 = vmul.f32 %v308_v29, %v163_v30 }
 0x12f   :  { %v165_v32 = vmul.f32 0.5, %v164_v31 }
 0x131   :  { %v166_v33 = vsub.f32 1.5, %v165_v32 }
 0x133   :  { %v167_v35 = vmul.f32 %v308_v29, %v166_v33 }
 0x135   :  { %v171_v36 = vsel %vm170_vm5, %v308_v29, %v167_v35 }
 0x136   :  { %v173_v38 = vmul.f32 %v172_v34, %v171_v36 }
 0x138   :  { %v175_v39 = vmul.f32 %v173_v38, %v152_v22  ;;  %v174_v40 = vmul.f32 %v173_v38, %v139_v6 }
 0x13a   :  { %v177_v41 = vsub.f32 %v176_v37, %v175_v39 }
 0x13c   :  { %v178_v42 = vadd.f32 %v177_v41, %v174_v40 }
 0x13e   :  { %v179_v43 = vmax.f32 %v178_v42, 0.0 }
 0x140   :  { %292 = vmatmul.msk.f32.vlgmr.msra.gmra.mxu1 %vm141_vm1, %v179_v43 }
 0x1bd   :  { %v206_v46 = vpop.f32.mrf.mxu1 }
 0x1be   :  { %v207_v47 = vadd.f32 %v206_v46, %v185_v45 }
 0x1c0   :  { %v209_v48 = vsel %vm141_vm1, %v207_v47, 0.0  ;;  %v213_v49 = vmul.f32 %v207_v47, %v207_v47 }
 0x1c1   :  { %210 = vadd.xlane.f32.xlu1 %v209_v48 }
 0x1c2   :  { %v214_v50 = vsel %vm141_vm1, %v213_v49, 0.0 }
 0x1c9   :  { %215 = vadd.xlane.f32.xlu1 %v214_v50 }
 0x234   :  { %v211_v51 = vpop.xlane.xlu1 %210 }
 0x235   :  { %v212_v56 = vmul.f32 %v211_v51, %v151_v19 }
 0x237   :  { %v218_v58 = vmul.f32 %v212_v56, %v212_v56 }
 0x23c   :  { %v216_v57 = vpop.xlane.xlu1 %215 }
 0x23d   :  { %v217_v59 = vmul.f32 %v216_v57, %v151_v19 }
 0x23f   :  { %v219_v60 = vsub.f32 %v217_v59, %v218_v58 }
 0x241   :  { %v220_v61 = vmax.f32 %v219_v60, 0.0 }
 0x243   :  { %v221_v62 = vadd.f32 1e-05, %v220_v61 }
 0x245   :  { %309 = vrsqrt.f32 %v221_v62  ;;  %vm228_vm7 = vweird.f32 %v221_v62 }
 0x24b   :  { %v310_v63 = vpop.eup %309 }
 0x24c   :  { %v223_v0 = vmul.f32 %v310_v63, %v221_v62  ;;  %vm229_vm6 = vweird.f32 %v310_v63 }
 0x24d   :  { %vm230_vm8 = vmor %vm228_vm7, %vm229_vm6 }
 0x24e   :  { %v224_v1 = vmul.f32 %v310_v63, %v223_v0 }
 0x250   :  { %v225_v2 = vmul.f32 0.5, %v224_v1 }
 0x252   :  { %v226_v3 = vsub.f32 1.5, %v225_v2 }
 0x254   :  { %v227_v5 = vmul.f32 %v310_v63, %v226_v3 }
 0x256   :  { %v231_v6 = vsel %vm230_vm8, %v310_v63, %v227_v5 }
 0x257   :  { %v233_v8 = vmul.f32 %v232_v4, %v231_v6 }
 0x259   :  { %v235_v9 = vmul.f32 %v233_v8, %v212_v56  ;;  %v234_v10 = vmul.f32 %v233_v8, %v207_v47 }
 0x25b   :  { %v237_v11 = vsub.f32 %v236_v7, %v235_v9 }
 0x25d   :  { %v238_v12 = vadd.f32 %v237_v11, %v234_v10 }
 0x25f   :  { %v239_v13 = vmax.f32 %v238_v12, 0.0 }
 0x261   :  { %293 = vmatmul.msk.f32.vlgmr.msra.gmra.mxu2 %vm141_vm1, %v239_v13 }
 0x2e4   :  { %v266_v15 = vpop.f32.mrf.mxu2 }
 0x2e5   :  { %v267_v16 = vadd.f32 %v304_v14, %v266_v15 }
 0x2e7   :  { %311 = vtanh.f32 %v267_v16 }
 0x2ed   :  { %v312_v17 = vpop.eup %311 }
 0x2ee   :  { %270 = vst [vmem:[#allocation13] sm:$0xff] %v312_v17 }
 0x2ef   :  { %281 = dma.vmem_to_hbm [thread:$0]  %s277_s5, 128, %s279_s27, [#allocation4]  }
 0x2f0   :  { %489 = dma.done.wait [#allocation4], 128  }
 0x2f1   :  { %490 = vsyncadd [#allocation4], 4294967168 }
 0x2f2   :  { %286 = vsyncpa [#allocation3], 1 }
 0x2f3   :  { %287 = vsyncpa [#allocation6], 1 }
 0x2f4   :  { %288 = vsyncpa [#allocation9], 1 }
 0x2f5   :  { %289 = vsyncpa [#allocation12], 1 }
 0x2f6   :  { %290 = vsyncpa [#allocation4], 1 }

</bundles_post_ra>
